<compile_context>
chip_gen: v5e
topology: v5e:2x2
jax: 0.10.0
libtpu: 0.0.40
codegen_flags: <defaults>
</compile_context>

<pallas_src>
import functools
import numpy as np

import jax
import jax.numpy as jnp
from jax import lax
from jax.experimental import pallas as pl
from jax.experimental.pallas import tpu as pltpu


def _round_up(x, m):
    return (x + m - 1) // m * m


# -----------------------------------------------------------------------------
# Kernel 1: brute-force point-in-triangle search.
# Grid = (point tiles, face tiles).  Output fid [1, TP] is a resident
# min-accumulator across the face-tile (reduction) axis.
# -----------------------------------------------------------------------------
def _find_face_kernel(pts_ref, coef_ref, fid_ref, *, face_tile):
    j = pl.program_id(1)

    px = pts_ref[0:1, :]                      # [1, TP]
    py = pts_ref[1:2, :]                      # [1, TP]
    eps = jnp.float32(1e-6)

    def edge(k):
        a = coef_ref[:, 3 * k + 0:3 * k + 1]  # [TF, 1]
        b = coef_ref[:, 3 * k + 1:3 * k + 2]
        c = coef_ref[:, 3 * k + 2:3 * k + 3]
        return a * px + b * py + c            # [TF, TP]

    inside = (edge(0) >= -eps) & (edge(1) >= -eps) & (edge(2) >= -eps)

    big = jnp.int32(2 ** 30)
    face_iota = lax.broadcasted_iota(jnp.int32, inside.shape, 0) + j * face_tile
    cand = jnp.where(inside, face_iota, big)
    tile_min = jnp.min(cand, axis=0, keepdims=True)     # [1, TP] (XLU reduce)

    @pl.when(j == 0)
    def _():
        fid_ref[...] = jnp.full(fid_ref.shape, big, jnp.int32)

    fid_ref[...] = jnp.minimum(fid_ref[...], tile_min)

    @pl.when(j == pl.num_programs(1) - 1)
    def _():
        cur = fid_ref[...]
        fid_ref[...] = jnp.where(cur == big, jnp.int32(-1), cur)


def find_faces(points, tri_a, tri_b, tri_c, *, point_tile=1024, face_tile=256):
    """points [M,2]; tri_* [F,2] (CCW vertex coords per face) -> face ids [M]."""
    M = points.shape[0]
    F = tri_a.shape[0]
    f32 = jnp.float32

    TP = min(point_tile, _round_up(M, 128))
    Mp = _round_up(M, TP)
    TF = min(face_tile, _round_up(F, 8))
    Fp = _round_up(F, TF)

    # points [2, Mp]; padded points placed far outside every triangle -> id -1
    # (they are sliced off anyway).
    pts = jnp.concatenate(
        [points.astype(f32).T, jnp.full((2, Mp - M), 1e6, f32)], axis=1)

    # per-edge half-plane coefficients for CCW triangle (A,B,C):
    #   s_edge(P->Q)(x) = a*px + b*py + c  with a = -(Qy-Py), b = (Qx-Px),
    #   c = (Qy-Py)*Px - (Qx-Px)*Py  (same signed area as cross((Q-P),(x-P)))
    def edge_coef(P, Q):
        a = -(Q[:, 1] - P[:, 1])
        b = (Q[:, 0] - P[:, 0])
        c = (Q[:, 1] - P[:, 1]) * P[:, 0] - (Q[:, 0] - P[:, 0]) * P[:, 1]
        return a, b, c

    cols = []
    for P, Q in ((tri_a, tri_b), (tri_b, tri_c), (tri_c, tri_a)):
        cols.extend(edge_coef(P.astype(f32), Q.astype(f32)))
    coef = jnp.stack(cols, axis=1)                                   # [F, 9]
    # degenerate padding faces: a = b = 0, c = -1e30 -> never "inside"
    pad = jnp.tile(jnp.array([[0.0, 0.0, -1e30] * 3], f32), (Fp - F, 1))
    coef = jnp.concatenate([coef, pad], axis=0)                      # [Fp, 9]

    kernel = functools.partial(_find_face_kernel, face_tile=TF)
    fid = pl.pallas_call(
        kernel,
        out_shape=jax.ShapeDtypeStruct((1, Mp), jnp.int32),
        grid=(Mp // TP, Fp // TF),
        in_specs=[pl.BlockSpec((2, TP), lambda i, j: (0, i)),
                  pl.BlockSpec((TF, 9), lambda i, j: (j, 0))],
        out_specs=pl.BlockSpec((1, TP), lambda i, j: (0, i)),
        compiler_params=pltpu.CompilerParams(
            dimension_semantics=("parallel", "arbitrary")),
    )(pts, coef)
    return fid[0, :M]


# -----------------------------------------------------------------------------
# Kernel 2: fused get_areas + get_tutte_from_triangle + compute_distortion.
# Dense layout: every component is a [TR, LANES] (8,128)-tiled slab.
# -----------------------------------------------------------------------------
def _tutte_point_kernel(p_ref, o_ref, n_ref, pred_ref, dist_ref):
    px, py = p_ref[0], p_ref[1]           # [TR, L]
    ax, ay = o_ref[0], o_ref[1]
    bx, by = o_ref[2], o_ref[3]
    cx, cy = o_ref[4], o_ref[5]

    # barycentric sub-areas (matches TutteLayer.get_areas)
    area_a = jnp.abs((px - bx) * (py - cy) - (py - by) * (px - cx)) * 0.5
    area_b = jnp.abs((px - ax) * (py - cy) - (py - ay) * (px - cx)) * 0.5
    area_c = jnp.abs((px - ax) * (py - by) - (py - ay) * (px - bx)) * 0.5
    total = area_a + area_b + area_c

    nax, nay = n_ref[0], n_ref[1]
    nbx, nby = n_ref[2], n_ref[3]
    ncx, ncy = n_ref[4], n_ref[5]

    inv_total = pl.reciprocal(total, approx=True)       # EUP slot
    pred_ref[0] = (nax * area_a + nbx * area_b + ncx * area_c) * inv_total
    pred_ref[1] = (nay * area_a + nby * area_b + ncy * area_c) * inv_total

    # affine distortion: J = Q @ P^{-1}  (closed form of the per-point 6x6
    # solve in compute_distortion; identical solution for non-degenerate tris)
    p00, p01 = bx - ax, cx - ax
    p10, p11 = by - ay, cy - ay
    q00, q01 = nbx - nax, ncx - nax
    q10, q11 = nby - nay, ncy - nay
    inv_det = pl.reciprocal(p00 * p11 - p01 * p10, approx=True)
    dist_ref[0] = (q00 * p11 - q01 * p10) * inv_det
    dist_ref[1] = (q01 * p00 - q00 * p01) * inv_det
    dist_ref[2] = (q10 * p11 - q11 * p10) * inv_det
    dist_ref[3] = (q11 * p00 - q10 * p01) * inv_det


def tutte_interp_distortion(points, orig_tri, new_tri, *, lanes=None):
    """points [M,2]; orig_tri/new_tri [M,3,2] -> (pred [M,2], distortion [M,2,2])."""
    M = points.shape[0]
    f32 = jnp.float32
    L = lanes if lanes is not None else min(512, _round_up(M, 128))

    rows_needed = max(-(-M // L), 1)
    TR = min(32, _round_up(rows_needed, 8))       # sublane-tile rows (mult of 8)
    R = _round_up(rows_needed, TR)
    total = R * L
    pad_n = total - M

    # pad with a valid unit triangle + its centroid -> finite results in padded
    # lanes (no inf/NaN even with approx reciprocal); sliced off below.
    pad_pt = jnp.array([[1.0 / 3.0, 1.0 / 3.0]], f32)
    pad_tri = jnp.array([[0.0, 0.0, 1.0, 0.0, 0.0, 1.0]], f32)

    pts = jnp.concatenate(
        [points.astype(f32), jnp.broadcast_to(pad_pt, (pad_n, 2))], axis=0)
    o6 = jnp.concatenate(
        [orig_tri.reshape(M, 6).astype(f32), jnp.broadcast_to(pad_tri, (pad_n, 6))], axis=0)
    n6 = jnp.concatenate(
        [new_tri.reshape(M, 6).astype(f32), jnp.broadcast_to(pad_tri, (pad_n, 6))], axis=0)

    p_in = pts.T.reshape(2, R, L)
    o_in = o6.T.reshape(6, R, L)
    n_in = n6.T.reshape(6, R, L)

    pred, dist = pl.pallas_call(
        _tutte_point_kernel,
        out_shape=(jax.ShapeDtypeStruct((2, R, L), f32),
                   jax.ShapeDtypeStruct((4, R, L), f32)),
        grid=(R // TR,),
        in_specs=[pl.BlockSpec((2, TR, L), lambda i: (0, i, 0)),
                  pl.BlockSpec((6, TR, L), lambda i: (0, i, 0)),
                  pl.BlockSpec((6, TR, L), lambda i: (0, i, 0))],
        out_specs=(pl.BlockSpec((2, TR, L), lambda i: (0, i, 0)),
                   pl.BlockSpec((4, TR, L), lambda i: (0, i, 0))),
        compiler_params=pltpu.CompilerParams(
            dimension_semantics=("parallel",)),
    )(p_in, o_in, n_in)

    pred_points = pred.reshape(2, total)[:, :M].T              # [M, 2]
    distortion = dist.reshape(4, total)[:, :M].T.reshape(M, 2, 2)
    return pred_points, distortion


# -----------------------------------------------------------------------------
# Plain-JAX glue: Tutte embedding (boundary placement + Laplacian solve).
# -----------------------------------------------------------------------------
def tutte_embedding(W_var, angle_var, edge_index, n_vert, bound_verts, interior_verts):
    W = jax.nn.sigmoid(W_var) * (1.0 - 0.4) + 0.2                 # [1, E]
    ang = jax.nn.sigmoid(angle_var) * (1.0 - 0.4) + 0.2           # [1, nb]
    ang = ang / jnp.sum(ang, axis=1, keepdims=True)
    t = (jnp.cumsum(ang, axis=1) * 2.0 * jnp.pi).reshape(-1)

    # square boundary map (circle_map=False path of tutte_embedding_sparse)
    pi = jnp.pi
    m1 = (t > 7 * pi / 4) | (t <= pi / 4)
    m2 = (t > pi / 4) & (t <= 3 * pi / 4)
    m3 = (t > 3 * pi / 4) & (t <= 5 * pi / 4)
    tan_t = jnp.tan(t)
    bpx = jnp.where(m1, 1.0, jnp.where(m2, 1.0 / tan_t, jnp.where(m3, -1.0, -1.0 / tan_t)))
    bpy = jnp.where(m1, tan_t, jnp.where(m2, 1.0, jnp.where(m3, -tan_t, -1.0)))
    bound_pos = jnp.stack([bpx, bpy], axis=-1).astype(jnp.float32)   # [nb, 2]

    # dense graph Laplacian L = D - A (batch_size = 1, same as get_laplacian)
    w = W[0]
    L = jnp.zeros((n_vert, n_vert), jnp.float32)
    L = L.at[edge_index[0], edge_index[1]].add(-w)
    deg = jnp.zeros((n_vert,), jnp.float32).at[edge_index[0]].add(w)
    L = L + jnp.diag(deg)

    # rhs: b = -L[:, bound] @ bound_pos ; solve interior block
    b_full = -(L[:, bound_verts] @ bound_pos)                     # [n_vert, 2]
    A_ii = L[interior_verts][:, interior_verts]
    # TODO(synk): original uses a float64 sparse CPU solve; replaced with dense
    # float32 jnp.linalg.solve (no sparse / fp64 solver available on TPU).
    x = jnp.linalg.solve(A_ii, b_full[interior_verts])

    out = jnp.zeros((n_vert, 2), jnp.float32)
    out = out.at[bound_verts].set(bound_pos)
    out = out.at[interior_verts].set(x)
    return out[None]                                              # [1, n_vert, 2]


def tutte_layer_forward(input_points, W_var, angle_var, mesh):
    verts, faces, edge_index, bound_verts, interior_verts = mesh
    B, N, _ = input_points.shape
    pts_flat = input_points.reshape(B * N, 2)

    # 1) point -> containing triangle  (Pallas kernel 1)
    tri_a = verts[faces[:, 0]]
    tri_b = verts[faces[:, 1]]
    tri_c = verts[faces[:, 2]]
    face_ids = find_faces(pts_flat, tri_a, tri_b, tri_c)          # [B*N]
    input_nodes = faces[face_ids]                                 # [B*N, 3]

    # 2) Tutte embedding of the mesh (JAX glue + dense solve)
    new_vertices = tutte_embedding(W_var, angle_var, edge_index,
                                   verts.shape[0], bound_verts, interior_verts)

    # 3) per-point areas + interpolation + distortion (Pallas kernel 2)
    orig_tri = verts[input_nodes]                                 # [B*N, 3, 2]
    new_tri = new_vertices[0][input_nodes]                        # [B*N, 3, 2]
    pred, dist = tutte_interp_distortion(pts_flat, orig_tri, new_tri)

    pred_points = pred.reshape(B, N, 2)
    distortions = dist                                            # [B*N, 2, 2]
    return pred_points, new_vertices, distortions, face_ids


# -----------------------------------------------------------------------------
# Synthetic deterministic mesh (replaces scipy Delaunay / mesh file).
# -----------------------------------------------------------------------------
def build_grid_mesh(G=5):
    xs = np.linspace(-1.0, 1.0, G).astype(np.float32)
    verts = np.zeros((G * G, 2), np.float32)
    for i in range(G):
        for j in range(G):
            verts[i * G + j] = [xs[j], xs[i]]
    faces = []
    for i in range(G - 1):
        for j in range(G - 1):
            v = i * G + j
            faces.append([v, v + 1, v + G])            # CCW
            faces.append([v + 1, v + G + 1, v + G])    # CCW
    faces = np.array(faces, np.int32)

    und = set()
    for f in faces:
        for a, b in ((f[0], f[1]), (f[1], f[2]), (f[2], f[0])):
            und.add((min(int(a), int(b)), max(int(a), int(b))))
    und = sorted(und)
    src = [a for a, b in und] + [b for a, b in und]
    dst = [b for a, b in und] + [a for a, b in und]
    edge_index = np.array([src, dst], np.int32)        # both directions

    bound = []
    for j in range(G - 1):
        bound.append(j)                                # bottom
    for i in range(G - 1):
        bound.append(i * G + (G - 1))                  # right
    for j in range(G - 1, 0, -1):
        bound.append((G - 1) * G + j)                  # top
    for i in range(G - 1, 0, -1):
        bound.append(i * G)                            # left
    bound = np.array(bound, np.int32)
    interior = np.array(sorted(set(range(G * G)) - set(bound.tolist())), np.int32)
    return verts, faces, edge_index, bound, interior


if __name__ == "__main__":
    G = 5
    verts_np, faces_np, edges_np, bound_np, interior_np = build_grid_mesh(G)
    n_vert = verts_np.shape[0]
    n_edges = edges_np.shape[1]
    n_bound = bound_np.shape[0]

    mesh = (jnp.asarray(verts_np), jnp.asarray(faces_np), jnp.asarray(edges_np),
            jnp.asarray(bound_np), jnp.asarray(interior_np))

    key = jax.random.PRNGKey(0)
    k1, k2, k3 = jax.random.split(key, 3)
    # deterministic stand-ins for torch.nn.init.uniform_ parameters
    W_var = jax.random.uniform(k1, (1, n_edges), jnp.float32)
    angle_var = jax.random.uniform(k2, (1, n_bound), jnp.float32)

    B, N = 1, 128   # forward implies input batch == parameter batch (1)
    input_points = jax.random.uniform(k3, (B, N, 2), jnp.float32,
                                      minval=-0.95, maxval=0.95)

    pred_points, new_vertices, distortions, face_ids = tutte_layer_forward(
        input_points, W_var, angle_var, mesh)
    jax.block_until_ready((pred_points, new_vertices, distortions, face_ids))

    assert pred_points.shape == (B, N, 2)
    assert new_vertices.shape == (1, n_vert, 2)
    assert distortions.shape == (B * N, 2, 2)
    assert bool(jnp.all(face_ids >= 0))
    assert bool(jnp.all(jnp.isfinite(pred_points)))
    assert bool(jnp.all(jnp.isfinite(new_vertices)))
    assert bool(jnp.all(jnp.isfinite(distortions)))
    print("KERNEL_OK")
</pallas_src>

<mosaic_0001>
module attributes {stable_mosaic.version = 11 : i64} {
  func.func @_find_face_kernel(%arg0: i32, %arg1: i32, %arg2: memref<2x128xf32, #tpu.memory_space<vmem>>, %arg3: memref<32x9xf32, #tpu.memory_space<vmem>>, %arg4: memref<1x128xi32, #tpu.memory_space<vmem>>) attributes {dimension_semantics = [#tpu.dimension_semantics<parallel>, #tpu.dimension_semantics<arbitrary>], iteration_bounds = array<i64: 1, 1>, scalar_prefetch = 0 : i64, scratch_operands = 0 : i64, tpu.core_type = #tpu.core_type<tc>, window_params = [{transform_indices = @transform_0, window_bounds = array<i64: 2, 128>}, {transform_indices = @transform_1, window_bounds = array<i64: 32, 9>}, {transform_indices = @transform_2, window_bounds = array<i64: 1, 128>}]} {
    %c0 = arith.constant 0 : index
    %c0_0 = arith.constant 0 : index
    %0 = vector.load %arg2[%c0, %c0_0] : memref<2x128xf32, #tpu.memory_space<vmem>>, vector<1x128xf32>
    %c1 = arith.constant 1 : index
    %c0_1 = arith.constant 0 : index
    %1 = vector.load %arg2[%c1, %c0_1] : memref<2x128xf32, #tpu.memory_space<vmem>>, vector<1x128xf32>
    %c0_2 = arith.constant 0 : index
    %c0_3 = arith.constant 0 : index
    %2 = vector.load %arg3[%c0_2, %c0_3] : memref<32x9xf32, #tpu.memory_space<vmem>>, vector<32x1xf32>
    %c0_4 = arith.constant 0 : index
    %c1_5 = arith.constant 1 : index
    %3 = vector.load %arg3[%c0_4, %c1_5] : memref<32x9xf32, #tpu.memory_space<vmem>>, vector<32x1xf32>
    %c0_6 = arith.constant 0 : index
    %c2 = arith.constant 2 : index
    %4 = vector.load %arg3[%c0_6, %c2] : memref<32x9xf32, #tpu.memory_space<vmem>>, vector<32x1xf32>
    %5 = vector.broadcast %2 : vector<32x1xf32> to vector<32x128xf32>
    %6 = vector.broadcast %0 : vector<1x128xf32> to vector<32x128xf32>
    %7 = arith.mulf %5, %6 : vector<32x128xf32>
    %8 = vector.broadcast %3 : vector<32x1xf32> to vector<32x128xf32>
    %9 = vector.broadcast %1 : vector<1x128xf32> to vector<32x128xf32>
    %10 = arith.mulf %8, %9 : vector<32x128xf32>
    %11 = arith.addf %7, %10 : vector<32x128xf32>
    %12 = vector.broadcast %4 : vector<32x1xf32> to vector<32x128xf32>
    %13 = arith.addf %11, %12 : vector<32x128xf32>
    %cst = arith.constant 0.000000e+00 : f32
    %cst_7 = arith.constant 9.99999997E-7 : f32
    %14 = arith.subf %cst, %cst_7 : f32
    %15 = vector.broadcast %14 : f32 to vector<32x128xf32>
    %16 = arith.cmpf oge, %13, %15 : vector<32x128xf32>
    %c0_8 = arith.constant 0 : index
    %c3 = arith.constant 3 : index
    %17 = vector.load %arg3[%c0_8, %c3] : memref<32x9xf32, #tpu.memory_space<vmem>>, vector<32x1xf32>
    %c0_9 = arith.constant 0 : index
    %c4 = arith.constant 4 : index
    %18 = vector.load %arg3[%c0_9, %c4] : memref<32x9xf32, #tpu.memory_space<vmem>>, vector<32x1xf32>
    %c0_10 = arith.constant 0 : index
    %c5 = arith.constant 5 : index
    %19 = vector.load %arg3[%c0_10, %c5] : memref<32x9xf32, #tpu.memory_space<vmem>>, vector<32x1xf32>
    %20 = vector.broadcast %17 : vector<32x1xf32> to vector<32x128xf32>
    %21 = vector.broadcast %0 : vector<1x128xf32> to vector<32x128xf32>
    %22 = arith.mulf %20, %21 : vector<32x128xf32>
    %23 = vector.broadcast %18 : vector<32x1xf32> to vector<32x128xf32>
    %24 = vector.broadcast %1 : vector<1x128xf32> to vector<32x128xf32>
    %25 = arith.mulf %23, %24 : vector<32x128xf32>
    %26 = arith.addf %22, %25 : vector<32x128xf32>
    %27 = vector.broadcast %19 : vector<32x1xf32> to vector<32x128xf32>
    %28 = arith.addf %26, %27 : vector<32x128xf32>
    %cst_11 = arith.constant 0.000000e+00 : f32
    %cst_12 = arith.constant 9.99999997E-7 : f32
    %29 = arith.subf %cst_11, %cst_12 : f32
    %30 = vector.broadcast %29 : f32 to vector<32x128xf32>
    %31 = arith.cmpf oge, %28, %30 : vector<32x128xf32>
    %32 = arith.andi %16, %31 : vector<32x128xi1>
    %c0_13 = arith.constant 0 : index
    %c6 = arith.constant 6 : index
    %33 = vector.load %arg3[%c0_13, %c6] : memref<32x9xf32, #tpu.memory_space<vmem>>, vector<32x1xf32>
    %c0_14 = arith.constant 0 : index
    %c7 = arith.constant 7 : index
    %34 = vector.load %arg3[%c0_14, %c7] : memref<32x9xf32, #tpu.memory_space<vmem>>, vector<32x1xf32>
    %c0_15 = arith.constant 0 : index
    %c8 = arith.constant 8 : index
    %35 = vector.load %arg3[%c0_15, %c8] : memref<32x9xf32, #tpu.memory_space<vmem>>, vector<32x1xf32>
    %36 = vector.broadcast %33 : vector<32x1xf32> to vector<32x128xf32>
    %37 = vector.broadcast %0 : vector<1x128xf32> to vector<32x128xf32>
    %38 = arith.mulf %36, %37 : vector<32x128xf32>
    %39 = vector.broadcast %34 : vector<32x1xf32> to vector<32x128xf32>
    %40 = vector.broadcast %1 : vector<1x128xf32> to vector<32x128xf32>
    %41 = arith.mulf %39, %40 : vector<32x128xf32>
    %42 = arith.addf %38, %41 : vector<32x128xf32>
    %43 = vector.broadcast %35 : vector<32x1xf32> to vector<32x128xf32>
    %44 = arith.addf %42, %43 : vector<32x128xf32>
    %cst_16 = arith.constant 0.000000e+00 : f32
    %cst_17 = arith.constant 9.99999997E-7 : f32
    %45 = arith.subf %cst_16, %cst_17 : f32
    %46 = vector.broadcast %45 : f32 to vector<32x128xf32>
    %47 = arith.cmpf oge, %44, %46 : vector<32x128xf32>
    %48 = arith.andi %32, %47 : vector<32x128xi1>
    %49 = tpu.iota {dimensions = array<i32: 0>} : vector<32x128xi32>
    %c32_i32 = arith.constant 32 : i32
    %50 = arith.muli %arg1, %c32_i32 : i32
    %51 = vector.broadcast %50 : i32 to vector<32x128xi32>
    %52 = arith.addi %49, %51 : vector<32x128xi32>
    %c1073741824_i32 = arith.constant 1073741824 : i32
    %53 = vector.broadcast %c1073741824_i32 : i32 to vector<32x128xi32>
    %54 = arith.select %48, %52, %53 : vector<32x128xi1>, vector<32x128xi32>
    %cst_18 = arith.constant dense<2147483647> : vector<128xi32>
    %55 = vector.multi_reduction <minsi>, %54, %cst_18 [0] : vector<32x128xi32> to vector<128xi32>
    %56 = vector.shape_cast %55 : vector<128xi32> to vector<1x128xi32>
    %c0_i32 = arith.constant 0 : i32
    %57 = arith.cmpi eq, %arg1, %c0_i32 : i32
    %58 = arith.extui %57 : i1 to i32
    %c1073741824_i32_19 = arith.constant 1073741824 : i32
    %c0_i32_20 = arith.constant 0 : i32
    %59 = arith.cmpi ne, %58, %c0_i32_20 : i32
    scf.if %59 {
      %66 = vector.broadcast %c1073741824_i32_19 : i32 to vector<1x128xi32>
      %c0_28 = arith.constant 0 : index
      %c0_29 = arith.constant 0 : index
      %67 = vector.load %arg4[%c0_28, %c0_29] : memref<1x128xi32, #tpu.memory_space<vmem>>, vector<1x128xi32>
      tpu.vector_store %arg4[%c0_28, %c0_29], %66 {strides = array<i32>} : memref<1x128xi32, #tpu.memory_space<vmem>>, vector<1x128xi32>,
    } else {
    }
    %c0_21 = arith.constant 0 : index
    %c0_22 = arith.constant 0 : index
    %60 = vector.load %arg4[%c0_21, %c0_22] : memref<1x128xi32, #tpu.memory_space<vmem>>, vector<1x128xi32>
    %61 = arith.minsi %60, %56 : vector<1x128xi32>
    %c0_23 = arith.constant 0 : index
    %c0_24 = arith.constant 0 : index
    %62 = vector.load %arg4[%c0_23, %c0_24] : memref<1x128xi32, #tpu.memory_space<vmem>>, vector<1x128xi32>
    tpu.vector_store %arg4[%c0_23, %c0_24], %61 {strides = array<i32>} : memref<1x128xi32, #tpu.memory_space<vmem>>, vector<1x128xi32>,
    %c0_i32_25 = arith.constant 0 : i32
    %63 = arith.cmpi eq, %arg1, %c0_i32_25 : i32
    %64 = arith.extui %63 : i1 to i32
    %c1073741824_i32_26 = arith.constant 1073741824 : i32
    %c0_i32_27 = arith.constant 0 : i32
    %65 = arith.cmpi ne, %64, %c0_i32_27 : i32
    scf.if %65 {
      %c0_28 = arith.constant 0 : index
      %c0_29 = arith.constant 0 : index
      %66 = vector.load %arg4[%c0_28, %c0_29] : memref<1x128xi32, #tpu.memory_space<vmem>>, vector<1x128xi32>
      %67 = vector.broadcast %c1073741824_i32_26 : i32 to vector<1x128xi32>
      %68 = arith.cmpi eq, %66, %67 : vector<1x128xi32>
      %c-1_i32 = arith.constant -1 : i32
      %69 = vector.broadcast %c-1_i32 : i32 to vector<1x128xi32>
      %70 = arith.select %68, %69, %66 : vector<1x128xi1>, vector<1x128xi32>
      %c0_30 = arith.constant 0 : index
      %c0_31 = arith.constant 0 : index
      %71 = vector.load %arg4[%c0_30, %c0_31] : memref<1x128xi32, #tpu.memory_space<vmem>>, vector<1x128xi32>
      tpu.vector_store %arg4[%c0_30, %c0_31], %70 {strides = array<i32>} : memref<1x128xi32, #tpu.memory_space<vmem>>, vector<1x128xi32>,
    } else {
    }
    return
  }
  func.func @transform_0(%arg0: i32, %arg1: i32) -> (i32, i32) {
    %c0_i32 = arith.constant 0 : i32
    %c0_i32_0 = arith.constant 0 : i32
    return %c0_i32, %arg0 : i32, i32
  }
  func.func @transform_1(%arg0: i32, %arg1: i32) -> (i32, i32) {
    %c0_i32 = arith.constant 0 : i32
    %c0_i32_0 = arith.constant 0 : i32
    return %arg1, %c0_i32 : i32, i32
  }
  func.func @transform_2(%arg0: i32, %arg1: i32) -> (i32, i32) {
    %c0_i32 = arith.constant 0 : i32
    %c0_i32_0 = arith.constant 0 : i32
    return %c0_i32, %arg0 : i32, i32
  }
}

</mosaic_0001>

<bundles_post_ra>
// kernel: tpu_custom_call.1
= control target key start
LH: loop header
LB: loop body
LE: loop exit
PB: predicated region body
PF: predicated region fallthrough
CT: control target
= control target key end

     0   :  { %v362_v2 = vmov 0   ;;  %s491_s0 = inlined_call_operand.vmem [shape: f32[2,128], index: 0, kind: input, shape index: {}]   ;;  %s492_s1 = inlined_call_operand.vmem [shape: f32[32,9], index: 1, kind: input, shape index: {}]   ;;  %s493_s2 = inlined_call_operand.hbm [shape: s32[1,128], index: 2, kind: output, shape index: {}]  }
   0x1   :  { %v391_v0 = vld [vmem:[%s492_s1 + $0x10] sm:$0xff]  ;;  %v396_v1 = vld [vmem:[%s492_s1] sm:$0xff]  ;;  %310 = vset.pattern.permute.xlu1 %v362_v2  ;;  %309 = vset.pattern.permute.xlu0 %v362_v2 }
   0x2   :  { %30 = vperm.xlu1 %310, %v391_v0   ;;  %20 = vperm.xlu0 %309, %v396_v1  }
   0x3   :  { %7 = vsyncpa [#allocation3], 0  ;;  %v363_v3 = vmov 1   ;;  %v404_v4 = vld [vmem:[%s492_s1 + $0x18] sm:$0xff]  ;;  %v15_v5 = vld [vmem:[%s492_s1 + $0x8] sm:$0xff]  ;;  %v364_v6 = vmov 2  }
   0x4   :  { %311 = vset.pattern.permute.xlu2 %v363_v3  ;;  %v365_v7 = vmov 3   ;;  %v366_v8 = vmov 4   ;;  %v367_v9 = vmov 5   ;;  %v368_v10 = vmov 6   ;;  %v434_v15 = vld [vmem:[%s491_s0 + $0x1] ss:$0 sm:$0xff] }
   0x5   :  { %44 = vperm.xlu2 %311, %v396_v1   ;;  %v369_v11 = vmov 7   ;;  %v370_v12 = vmov 8   ;;  %v439_v17 = vld [vmem:[%s491_s0] ss:$0 sm:$0xff]  ;;  %s372_s0 = smov [#allocation2]   ;;  %s289_s23 = sshll.u32 %s493_s2, 4  ;;  %s290_s23 = int_to_ptr.hbm [resolvable:$true] %s289_s23 }
   0x6   :  { %s287_s20 = sshll.u32 %s372_s0, 4  ;;  %s288_s20 = int_to_ptr.vmem [resolvable:$true] %s287_s20 }
   0xa   :  { %35 = vperm.xlu1 %310, %v404_v4   ;;  %25 = vperm.xlu0 %309, %v15_v5  }
   0xd   :  { %48 = vperm.xlu2 %311, %v15_v5  }
  0x12   :  { %313 = vset.pattern.permute.xlu1 %v363_v3  ;;  %312 = vset.pattern.permute.xlu0 %v363_v3 }
  0x13   :  { %56 = vperm.xlu1 %313, %v404_v4   ;;  %52 = vperm.xlu0 %312, %v391_v0  }
  0x15   :  { %314 = vset.pattern.permute.xlu2 %v364_v6 }
  0x16   :  { %69 = vperm.xlu2 %314, %v396_v1  }
  0x1b   :  { %315 = vset.pattern.permute.xlu1 %v364_v6  ;;  %316 = vset.pattern.permute.xlu0 %v364_v6 }
  0x1c   :  { %73 = vperm.xlu1 %315, %v15_v5   ;;  %81 = vperm.xlu0 %316, %v404_v4  }
  0x1e   :  { %77 = vperm.xlu2 %314, %v391_v0  }
  0x24   :  { %317 = vset.pattern.permute.xlu1 %v365_v7  ;;  %319 = vset.pattern.permute.xlu0 %v366_v8 }
  0x25   :  { %93 = vperm.xlu1 %317, %v396_v1   ;;  %113 = vperm.xlu0 %319, %v396_v1  }
  0x26   :  { %318 = vset.pattern.permute.xlu2 %v365_v7  ;;  %v371_v7 = vmov 1073741824  }
  0x27   :  { %97 = vperm.xlu2 %318, %v15_v5   ;;  %270 = vst [vmem:[#allocation2] sm:$0x1] %v371_v7 }
  0x2d   :  { %101 = vperm.xlu1 %317, %v391_v0   ;;  %323 = vset.pattern.permute.xlu0 %v367_v9 }
  0x2e   :  { %141 = vperm.xlu0 %323, %v15_v5  }
  0x2f   :  { %105 = vperm.xlu2 %318, %v404_v4  }
  0x35   :  { %320 = vset.pattern.permute.xlu1 %v366_v8 }
  0x36   :  { %117 = vperm.xlu1 %320, %v15_v5   ;;  %327 = vset.pattern.permute.xlu0 %v368_v10 }
  0x37   :  { %321 = vset.pattern.permute.xlu2 %v366_v8  ;;  %173 = vperm.xlu0 %327, %v391_v0  }
  0x38   :  { %121 = vperm.xlu2 %321, %v391_v0  }
  0x3e   :  { %125 = vperm.xlu1 %320, %v404_v4  }
  0x3f   :  { %330 = vset.pattern.permute.xlu0 %v369_v11 }
  0x40   :  { %322 = vset.pattern.permute.xlu2 %v367_v9  ;;  %197 = vperm.xlu0 %330, %v404_v4  }
  0x41   :  { %137 = vperm.xlu2 %322, %v396_v1  }
  0x46   :  { %324 = vset.pattern.permute.xlu1 %v367_v9 }
  0x47   :  { %145 = vperm.xlu1 %324, %v391_v0  }
  0x48   :  { %333 = vset.pattern.permute.xlu0 %v370_v12 }
  0x49   :  { %149 = vperm.xlu2 %322, %v404_v4  }
  0x4f   :  { %325 = vset.pattern.permute.xlu1 %v368_v10 }
  0x50   :  { %165 = vperm.xlu1 %325, %v396_v1  }
  0x51   :  { %326 = vset.pattern.permute.xlu2 %v368_v10 }
  0x52   :  { %169 = vperm.xlu2 %326, %v15_v5  }
  0x58   :  { %177 = vperm.xlu1 %325, %v404_v4  }
  0x5a   :  { %328 = vset.pattern.permute.xlu2 %v369_v11 }
  0x5b   :  { %185 = vperm.xlu2 %328, %v396_v1  }
  0x5f   :  { %v45_v13 = vpop.permute.xlu2 %44 }
  0x60   :  { %329 = vset.pattern.permute.xlu1 %v369_v11  ;;  %v60_v18 = vmul.f32 %v434_v15, %v45_v13  ;;  %v236_v13 = vlaneseq }
  0x61   :  { %189 = vperm.xlu1 %329, %v15_v5  }
  0x63   :  { %193 = vperm.xlu2 %328, %v391_v0  }
  0x67   :  { %v49_v14 = vpop.permute.xlu2 %48 }
  0x68   :  { %v61_v39 = vmul.f32 %v434_v15, %v49_v14 }
  0x69   :  { %331 = vset.pattern.permute.xlu1 %v370_v12 }
  0x6a   :  { %209 = vperm.xlu1 %331, %v396_v1  }
  0x6b   :  { %332 = vset.pattern.permute.xlu2 %v370_v12 }
  0x6c   :  { %213 = vperm.xlu2 %332, %v15_v5  }
  0x70   :  { %v70_v16 = vpop.permute.xlu2 %69 }
  0x72   :  { %217 = vperm.xlu1 %331, %v391_v0  }
  0x74   :  { %v31_v19 = vpop.permute.xlu1 %30  ;;  %221 = vperm.xlu2 %332, %v404_v4   ;;  %v21_v20 = vpop.permute.xlu0 %20 }
  0x75   :  { %v39_v21 = vmul.f32 %v439_v17, %v21_v20  ;;  %v41_v30 = vmul.f32 %v439_v17, %v31_v19 }
  0x77   :  { %v64_v22 = vadd.f32 %v60_v18, %v39_v21 }
  0x78   :  { %v78_v23 = vpop.permute.xlu2 %77 }
  0x79   :  { %v84_v24 = vadd.f32 %v70_v16, %v64_v22 }
  0x7b   :  { %vm88_vm0 = vcmp.ge.f32.partialorder %v84_v24, -1e-06 }
  0x7c   :  { %v36_v25 = vpop.permute.xlu1 %35  ;;  %v26_v26 = vpop.permute.xlu0 %25 }
  0x7d   :  { %v42_v31 = vmul.f32 %v439_v17, %v36_v25  ;;  %v40_v36 = vmul.f32 %v439_v17, %v26_v26  ;;  %v237_v26 = vshrl.u32 %v236_v13, 7 }
  0x7f   :  { %v65_v40 = vadd.f32 %v61_v39, %v40_v36 }
  0x81   :  { %v98_v27 = vpop.permute.xlu2 %97 }
  0x82   :  { %v109_v55 = vmul.f32 %v439_v17, %v98_v27 }
  0x85   :  { %v57_v28 = vpop.permute.xlu1 %56  ;;  %v53_v29 = vpop.permute.xlu0 %52 }
  0x86   :  { %v63_v32 = vmul.f32 %v434_v15, %v57_v28  ;;  %v62_v33 = vmul.f32 %v434_v15, %v53_v29 }
  0x88   :  { %v66_v34 = vadd.f32 %v62_v33, %v41_v30  ;;  %v449_v35 = vadd.f32 %v63_v32, %v42_v31  ;;  %v238_v31 = vadd.s32 8, %v237_v26 }
  0x89   :  { %v106_v37 = vpop.permute.xlu2 %105 }
  0x8a   :  { %v452_v38 = vadd.f32 %v78_v23, %v66_v34  ;;  %v111_v21 = vmul.f32 %v439_v17, %v106_v37 }
  0x8e   :  { %v74_v41 = vpop.permute.xlu1 %73  ;;  %v455_v42 = vpop.permute.xlu0 %81 }
  0x8f   :  { %v85_v43 = vadd.f32 %v74_v41, %v65_v40  ;;  %v87_v40 = vadd.f32 %v455_v42, %v449_v35 }
  0x91   :  { %vm89_vm3 = vcmp.ge.f32.partialorder %v85_v43, -1e-06  ;;  %vm91_vm13 = vcmp.ge.f32.partialorder %v87_v40, -1e-06 }
  0x92   :  { %v122_v44 = vpop.permute.xlu2 %121 }
  0x93   :  { %v130_v23 = vmul.f32 %v434_v15, %v122_v44 }
  0x97   :  { %v94_v45 = vpop.permute.xlu1 %93  ;;  %v114_v46 = vpop.permute.xlu0 %113 }
  0x98   :  { %v108_v47 = vmul.f32 %v439_v17, %v94_v45  ;;  %v128_v48 = vmul.f32 %v434_v15, %v114_v46 }
  0x9a   :  { %v132_v49 = vadd.f32 %v128_v48, %v108_v47  ;;  %v239_v47 = vadd.s32 16, %v237_v26 }
  0x9b   :  { %v138_v50 = vpop.permute.xlu2 %137 }
  0x9c   :  { %v152_v51 = vadd.f32 %v138_v50, %v132_v49 }
  0x9e   :  { %vm156_vm1 = vcmp.ge.f32.partialorder %v152_v51, -1e-06 }
  0x9f   :  { %vm459_vm2 = vmand %vm88_vm0, %vm156_vm1  ;;  %v102_v53 = vpop.permute.xlu1 %101  ;;  %vm90_vm0 = vcmp.ge.f32.partialorder %v452_v38, -1e-06 }
  0xa0   :  { %v142_v58 = vpop.permute.xlu0 %141  ;;  %v110_v24 = vmul.f32 %v439_v17, %v102_v53 }
  0xa2   :  { %v134_v33 = vadd.f32 %v130_v23, %v110_v24 }
  0xa3   :  { %v150_v57 = vpop.permute.xlu2 %149 }
  0xa8   :  { %v118_v54 = vpop.permute.xlu1 %117 }
  0xa9   :  { %v129_v56 = vmul.f32 %v434_v15, %v118_v54  ;;  %v174_v4 = vpop.permute.xlu0 %173 }
  0xaa   :  { %v182_v37 = vmul.f32 %v439_v17, %v174_v4 }
  0xab   :  { %v133_v59 = vadd.f32 %v129_v56, %v109_v55  ;;  %v271_v56 = vld [vmem:[#allocation2] sm:$0x1] }
  0xac   :  { %v170_v63 = vpop.permute.xlu2 %169 }
  0xad   :  { %v153_v60 = vadd.f32 %v142_v58, %v133_v59  ;;  %v181_v9 = vmul.f32 %v439_v17, %v170_v63 }
  0xaf   :  { %vm157_vm4 = vcmp.ge.f32.partialorder %v153_v60, -1e-06 }
  0xb0   :  { %vm465_vm5 = vmand %vm89_vm3, %vm157_vm4  ;;  %v126_v62 = vpop.permute.xlu1 %125 }
  0xb1   :  { %v131_v12 = vmul.f32 %v434_v15, %v126_v62 }
  0xb2   :  { %v198_v10 = vpop.permute.xlu0 %197 }
  0xb3   :  { %v203_v20 = vmul.f32 %v434_v15, %v198_v10  ;;  %v135_v25 = vadd.f32 %v131_v12, %v111_v21 }
  0xb5   :  { %v186_v1 = vpop.permute.xlu2 %185  ;;  %v155_v34 = vadd.f32 %v150_v57, %v135_v25 }
  0xb6   :  { %v200_v16 = vmul.f32 %v434_v15, %v186_v1 }
  0xb7   :  { %vm159_vm10 = vcmp.ge.f32.partialorder %v155_v34, -1e-06 }
  0xb8   :  { %vm163_vm15 = vmand %vm91_vm13, %vm159_vm10 }
  0xb9   :  { %v146_v0 = vpop.permute.xlu1 %145 }
  0xba   :  { %v154_v41 = vadd.f32 %v146_v0, %v134_v33 }
  0xbc   :  { %vm158_vm14 = vcmp.ge.f32.partialorder %v154_v41, -1e-06 }
  0xbd   :  { %v194_v3 = vpop.permute.xlu2 %193  ;;  %vm162_vm3 = vmand %vm90_vm0, %vm158_vm14 }
  0xbe   :  { %v202_v36 = vmul.f32 %v434_v15, %v194_v3 }
  0xc0   :  { %v206_v46 = vadd.f32 %v202_v36, %v182_v37 }
  0xc2   :  { %v166_v2 = vpop.permute.xlu1 %165 }
  0xc3   :  { %v180_v18 = vmul.f32 %v439_v17, %v166_v2 }
  0xc5   :  { %v204_v28 = vadd.f32 %v200_v16, %v180_v18 }
  0xc6   :  { %v214_v6 = vpop.permute.xlu2 %213 }
  0xca   :  { %v178_v5 = vpop.permute.xlu1 %177 }
  0xcb   :  { %v183_v19 = vmul.f32 %v439_v17, %v178_v5  ;;  %v240_v17 = vadd.s32 24, %v237_v26 }
  0xcd   :  { %v207_v27 = vadd.f32 %v203_v20, %v183_v19 }
  0xce   :  { %v222_v29 = vpop.permute.xlu2 %221 }
  0xcf   :  { %v227_v39 = vadd.f32 %v222_v29, %v207_v27 }
  0xd1   :  { %vm231_vm12 = vcmp.ge.f32.partialorder %v227_v39, -1e-06 }
  0xd2   :  { %vm235_vm1 = vmand %vm163_vm15, %vm231_vm12 }
  0xd3   :  { %v190_v8 = vpop.permute.xlu1 %189  ;;  %v250_v35 = vsel %vm235_vm1, %v240_v17, 1073741824 }
  0xd4   :  { %v201_v11 = vmul.f32 %v434_v15, %v190_v8 }
  0xd6   :  { %v205_v14 = vadd.f32 %v201_v11, %v181_v9 }
  0xd8   :  { %v225_v22 = vadd.f32 %v214_v6, %v205_v14 }
  0xda   :  { %vm229_vm6 = vcmp.ge.f32.partialorder %v225_v22, -1e-06 }
  0xdb   :  { %vm233_vm7 = vmand %vm465_vm5, %vm229_vm6 }
  0xdc   :  { %v210_v30 = vpop.permute.xlu1 %209  ;;  %v248_v44 = vsel %vm233_vm7, %v238_v31, 1073741824 }
  0xdd   :  { %v224_v32 = vadd.f32 %v210_v30, %v204_v28 }
  0xdf   :  { %vm228_vm8 = vcmp.ge.f32.partialorder %v224_v32, -1e-06 }
  0xe0   :  { %vm232_vm9 = vmand %vm459_vm2, %vm228_vm8 }
  0xe1   :  { %v247_v43 = vsel %vm232_vm9, %v237_v26, 1073741824 }
  0xe2   :  { %vm251_vm11 = vcmp.lt.s32.totalorder %v247_v43, %v248_v44 }
  0xe3   :  { %v252_v45 = vsel %vm251_vm11, %v247_v43, %v248_v44 }
  0xe4   :  { %v218_v15 = vpop.permute.xlu1 %217 }
  0xe5   :  { %v226_v48 = vadd.f32 %v218_v15, %v206_v46 }
  0xe7   :  { %vm230_vm4 = vcmp.ge.f32.partialorder %v226_v48, -1e-06 }
  0xe8   :  { %vm234_vm2 = vmand %vm162_vm3, %vm230_vm4 }
  0xe9   :  { %v249_v42 = vsel %vm234_vm2, %v239_v47, 1073741824 }
  0xea   :  { %vm253_vm5 = vcmp.lt.s32.totalorder %v249_v42, %v250_v35 }
  0xeb   :  { %v254_v49 = vsel %vm253_vm5, %v249_v42, %v250_v35 }
  0xec   :  { %vm255_vm6 = vcmp.lt.s32.totalorder %v252_v45, %v254_v49 }
  0xed   :  { %v256_v50 = vsel %vm255_vm6, %v252_v45, %v254_v49 }
  0xee   :  { %v257_v51 = vrot.slane %v256_v50, 4 }
  0xf0   :  { %vm258_vm7 = vcmp.lt.s32.totalorder %v256_v50, %v257_v51 }
  0xf1   :  { %v259_v52 = vsel %vm258_vm7, %v256_v50, %v257_v51 }
  0xf2   :  { %v260_v53 = vrot.slane %v259_v52, 2 }
  0xf4   :  { %vm261_vm8 = vcmp.lt.s32.totalorder %v259_v52, %v260_v53 }
  0xf5   :  { %v262_v54 = vsel %vm261_vm8, %v259_v52, %v260_v53 }
  0xf6   :  { %v263_v55 = vrot.slane %v262_v54, 1 }
  0xf8   :  { %vm264_vm9 = vcmp.lt.s32.totalorder %v262_v54, %v263_v55 }
  0xf9   :  { %v265_v38 = vsel %vm264_vm9, %v262_v54, %v263_v55 }
  0xfa   :  { %vm272_vm10 = vcmp.lt.s32.totalorder %v271_v56, %v265_v38 }
  0xfb   :  { %v273_v57 = vsel %vm272_vm10, %v271_v56, %v265_v38 }
  0xfc   :  { %274 = vst [vmem:[#allocation2] sm:$0x1] %v273_v57 }
 0x103   :  { %v278_v58 = vld [vmem:[#allocation2] sm:$0x1] }
 0x104   :  { %vm279_vm11 = vcmp.eq.s32.totalorder %v278_v58, 1073741824 }
 0x105   :  { %v280_v59 = vsel %vm279_vm11, 4294967295, %v278_v58 }
 0x106   :  { %281 = vst [vmem:[#allocation2] sm:$0x1] %v280_v59 }
 0x107   :  { %292 = dma.vmem_to_hbm [thread:$0]  %s288_s20, 16, %s290_s23, [#allocation3]  }
 0x108   :  { %360 = dma.done.wait [#allocation3], 16  }
 0x109   :  { %361 = vsyncadd [#allocation3], 4294967280 }
 0x10a   :  { %297 = vsyncpa [#allocation3], 1 }

</bundles_post_ra>
